<compile_context>
chip_gen: v6e
topology: v6e:2x2x1
jax: 0.10.0
libtpu: 0.0.40
codegen_flags: <defaults>
</compile_context>

<pallas_src>
import functools

import jax
import jax.numpy as jnp
from jax import lax
from jax.experimental import pallas as pl
from jax.experimental.pallas import tpu as pltpu


# ---------------------------------------------------------------------------
# Helpers: device-dependent knobs, padding, tiling, VMEM budgeting
# ---------------------------------------------------------------------------
def _round_up(n, m):
    return ((n + m - 1) // m) * m


def _device_kind():
    try:
        return jax.devices()[0].device_kind.lower()
    except Exception:
        return ""


def _is_v7():
    kind = _device_kind()
    return ("v7" in kind) or ("7x" in kind)


def _vmem_config():
    """(vmem_limit_bytes, working-set budget) per device generation."""
    if _is_v7():
        return 48 * 2 ** 20, 36 * 2 ** 20          # 64 MiB/TC physical
    return 80 * 2 ** 20, 60 * 2 ** 20              # v5e/v6e: 128 MiB physical


def _exp_dtype():
    """bf16 exp on v6e/v7x (EUP bf16), f32 on v5 and older (no bf16 EUP)."""
    kind = _device_kind()
    if any(f"v{v}" in kind for v in (2, 3, 4, 5)):
        return jnp.float32
    return jnp.bfloat16


def _pad_and_tile(n, target=512):
    """Return (padded_n, tile). Tile is the token (sublane) dim: needs %8==0."""
    if n <= target:
        pn = _round_up(n, 8)
        return pn, pn
    pn = _round_up(n, 128)
    t = (target // 128) * 128
    while pn % t:
        t -= 128
    return pn, t


def _stage2_vmem_bytes(tq, tk, d, inner, heads, dim_head, single_buf):
    """Rough per-step VMEM footprint of the attention kernel."""
    wbuf = 1 if single_buf else 2
    ld, li, lh = _round_up(d, 128), _round_up(inner, 128), _round_up(dim_head, 128)
    b = 2 * tq * ld * 2                          # x tile (bf16, double-buffered)
    b += 2 * 2 * tk * li * 2                     # k, v tiles (bf16, double-buffered)
    b += 2 * tq * ld * 4                         # out tile (f32)
    b += wbuf * 2 * (d * li + inner * ld)        # Wq + Wo (bf16)
    b += tq * li * 2                             # q scratch (bf16)
    b += 2 * heads * tq * 128 * 4                # m, l scratches (lane dim 1 -> 128)
    b += heads * tq * lh * 4                     # acc scratch (f32)
    b += heads * tq * tk * 6                     # s (f32) + p intermediates
    return b


def _shrink_tiles(tq, tk, np_, budget, d, inner, heads, dim_head, single_buf):
    while _stage2_vmem_bytes(tq, tk, d, inner, heads, dim_head, single_buf) > budget:
        if tk >= 256:
            tk //= 2
        elif tq >= 256:
            tq //= 2
        else:
            break
    return tq, tk


# ---------------------------------------------------------------------------
# Kernel 1: fused K/V projection.  x (1, TN, D) @ Wkv (D, 2*inner) -> k, v
# written as lane-dense (1, TN, inner) bf16 tiles (unmasked stores).
# ---------------------------------------------------------------------------
def kv_proj_kernel(x_ref, wkv_ref, k_ref, v_ref, *, inner):
    x = x_ref[0]                                                  # (TN, D) bf16
    kv = jnp.dot(x, wkv_ref[...], preferred_element_type=jnp.float32)  # (TN, 2*inner)
    k_ref[0] = kv[:, :inner].astype(k_ref.dtype)
    v_ref[0] = kv[:, inner:].astype(v_ref.dtype)


# ---------------------------------------------------------------------------
# Kernel 2: flash attention (online softmax over K tiles) with the Q projection
# fused at ki==0 and the output projection fused into the finalize step.
#   grid = (B, Np//TQ, Np//TK); last axis is the streaming (arbitrary) axis.
# ---------------------------------------------------------------------------
def flash_attn_kernel(x_ref, wq_ref, k_ref, v_ref, wo_ref, bo_ref, o_ref,
                      q_sc, m_sc, l_sc, acc_sc, *,
                      heads, dim_head, scale, kv_len, block_k, exp_dtype, mask_k):
    ki = pl.program_id(2)

    @pl.when(ki == 0)
    def _():
        # Project + scale Q for this (b, q-tile); lane-dense (TQ, inner) scratch.
        q = jnp.dot(x_ref[0], wq_ref[...],
                    preferred_element_type=jnp.float32) * scale
        q_sc[...] = q.astype(q_sc.dtype)
        m_sc[...] = jnp.full_like(m_sc, -jnp.inf)
        l_sc[...] = jnp.zeros_like(l_sc)
        acc_sc[...] = jnp.zeros_like(acc_sc)

    q = q_sc[...]                                                 # (TQ, inner) bf16
    k = k_ref[0]                                                  # (TK, inner) bf16
    v = v_ref[0]                                                  # (TK, inner) bf16

    # Per-head scores from static lane slices (contraction over dim_head);
    # stacked so the online-softmax update is batched over heads.
    dn = (((1,), (1,)), ((), ()))                                 # (TQ,dh)x(TK,dh)->(TQ,TK)
    s = jnp.stack(
        [lax.dot_general(q[:, h * dim_head:(h + 1) * dim_head],
                         k[:, h * dim_head:(h + 1) * dim_head], dn,
                         preferred_element_type=jnp.float32)
         for h in range(heads)], axis=0)                          # (H, TQ, TK) f32

    if mask_k:  # static flag: only emitted when the sequence was padded
        col = block_k * ki + lax.broadcasted_iota(jnp.int32, s.shape, 2)
        s = jnp.where(col < kv_len, s, -1e30)

    m_prev = m_sc[...]
    m_new = jnp.maximum(m_prev, jnp.max(s, axis=-1, keepdims=True))
    alpha = jnp.exp(m_prev - m_new)                               # f32
    p = jnp.exp((s - m_new).astype(exp_dtype))                    # bf16 exp on v6e/v7x
    l_sc[...] = alpha * l_sc[...] + jnp.sum(p, axis=-1, keepdims=True,
                                            dtype=jnp.float32)
    pv = jnp.stack(
        [jnp.dot(p[h].astype(v.dtype), v[:, h * dim_head:(h + 1) * dim_head],
                 preferred_element_type=jnp.float32)
         for h in range(heads)], axis=0)                          # (H, TQ, dh) f32
    acc_sc[...] = alpha * acc_sc[...] + pv
    m_sc[...] = m_new

    @pl.when(ki == pl.num_programs(2) - 1)
    def _():
        inv_l = pl.reciprocal(l_sc[...], approx=True)             # EUP slot
        out_h = (acc_sc[...] * inv_l).astype(jnp.bfloat16)        # (H, TQ, dh)
        # 'h q d -> q (h d)' merge, then ONE deep (inner-wide) projection matmul.
        merged = jnp.concatenate([out_h[h] for h in range(heads)], axis=-1)
        y = jnp.dot(merged, wo_ref[...], preferred_element_type=jnp.float32)
        o_ref[0] = (y + bo_ref[...]).astype(o_ref.dtype)


# ---------------------------------------------------------------------------
# Wrapper
# ---------------------------------------------------------------------------
def attention_forward(x, params, *, heads, dim_head, single_buffer_weights=True):
    """x: (B, N, D) float32 -> (B, N, D) float32 (Attention.forward, dropout=0)."""
    B, N, D = x.shape
    inner = heads * dim_head
    scale = dim_head ** -0.5

    wqkv = params["wqkv"]                       # (D, 3*inner) bf16
    wq = wqkv[:, :inner]                        # (D, inner)
    wkv = wqkv[:, inner:]                       # (D, 2*inner)
    wo = params["wo"]                           # (inner, D) bf16
    bo = params["bo"]                           # (1, D) f32

    vmem_limit, vmem_budget = _vmem_config()
    exp_dtype = _exp_dtype()
    compiler_kw = dict(vmem_limit_bytes=vmem_limit)

    # Token-dim padding + tiling (token dim is the sublane dim -> multiple of 8).
    Np, tile = _pad_and_tile(N, target=512)
    x_bf = x.astype(jnp.bfloat16)               # halve projection input DMA
    if Np != N:
        x_bf = jnp.pad(x_bf, ((0, 0), (0, Np - N), (0, 0)))

    def const_spec(shape):
        zeros = tuple(0 for _ in shape)
        if single_buffer_weights:
            # Grid-invariant weights: single-buffered to halve their VMEM footprint.
            return pl.BlockSpec(shape, lambda *_: zeros, pipeline_mode=pl.Buffered(1))
        return pl.BlockSpec(shape, lambda *_: zeros)

    # ---- stage 1: K/V projection (lane-dense (B, Np, inner) outputs) -------
    TN = tile
    kv_out = jax.ShapeDtypeStruct((B, Np, inner), jnp.bfloat16)
    flops1 = 2 * B * Np * D * (2 * inner)
    bytes1 = B * Np * D * 2 + D * 2 * inner * 2 + 2 * B * Np * inner * 2
    k_all, v_all = pl.pallas_call(
        functools.partial(kv_proj_kernel, inner=inner),
        out_shape=(kv_out, kv_out),
        grid_spec=pltpu.PrefetchScalarGridSpec(
            num_scalar_prefetch=0,
            grid=(B, Np // TN),
            in_specs=[
                pl.BlockSpec((1, TN, D), lambda b, n: (b, n, 0)),
                const_spec((D, 2 * inner)),
            ],
            out_specs=(
                pl.BlockSpec((1, TN, inner), lambda b, n: (b, n, 0)),
                pl.BlockSpec((1, TN, inner), lambda b, n: (b, n, 0)),
            ),
        ),
        compiler_params=pltpu.CompilerParams(
            dimension_semantics=("parallel", "parallel"), **compiler_kw),
        cost_estimate=pl.CostEstimate(flops=int(flops1), transcendentals=0,
                                      bytes_accessed=int(bytes1)),
    )(x_bf, wkv)

    # ---- stage 2: flash attention + fused Q projection + output projection --
    TQ, TK = _shrink_tiles(tile, tile, Np, vmem_budget, D, inner, heads, dim_head,
                           single_buffer_weights)
    if _is_v7() and B * (Np // TQ) < 2 and TQ >= 16 and (TQ // 2) % 8 == 0:
        TQ //= 2                                # keep both v7x TensorCores busy

    n_qt = Np // TQ
    flops2 = (2 * B * Np * D * inner                        # Q projection
              + 4 * B * heads * Np * Np * dim_head          # QK^T + PV
              + 2 * B * Np * inner * D)                     # output projection
    trans2 = B * heads * Np * Np
    bytes2 = (B * Np * D * 2 + n_qt * 2 * B * Np * inner * 2
              + 2 * 2 * D * inner + B * Np * D * 4)

    out = pl.pallas_call(
        functools.partial(flash_attn_kernel, heads=heads, dim_head=dim_head,
                          scale=scale, kv_len=N, block_k=TK,
                          exp_dtype=exp_dtype, mask_k=(Np != N)),
        out_shape=jax.ShapeDtypeStruct((B, Np, D), x.dtype),
        grid_spec=pltpu.PrefetchScalarGridSpec(
            num_scalar_prefetch=0,
            grid=(B, Np // TQ, Np // TK),
            in_specs=[
                pl.BlockSpec((1, TQ, D), lambda b, qi, ki: (b, qi, 0)),       # x tile
                const_spec((D, inner)),                                        # Wq
                pl.BlockSpec((1, TK, inner), lambda b, qi, ki: (b, ki, 0)),    # K tile
                pl.BlockSpec((1, TK, inner), lambda b, qi, ki: (b, ki, 0)),    # V tile
                const_spec((inner, D)),                                        # Wo
                const_spec((1, D)),                                            # bo
            ],
            out_specs=pl.BlockSpec((1, TQ, D), lambda b, qi, ki: (b, qi, 0)),
            scratch_shapes=[
                pltpu.VMEM((TQ, inner), jnp.bfloat16),           # projected & scaled Q
                pltpu.VMEM((heads, TQ, 1), jnp.float32),         # running max
                pltpu.VMEM((heads, TQ, 1), jnp.float32),         # running sum
                pltpu.VMEM((heads, TQ, dim_head), jnp.float32),  # accumulator
            ],
        ),
        compiler_params=pltpu.CompilerParams(
            dimension_semantics=("parallel", "parallel", "arbitrary"), **compiler_kw),
        cost_estimate=pl.CostEstimate(flops=int(flops2), transcendentals=int(trans2),
                                      bytes_accessed=int(bytes2)),
    )(x_bf, wq, k_all, v_all, wo, bo)

    if Np != N:
        out = out[:, :N, :]
    return out


# ---------------------------------------------------------------------------
# Deterministic parameter init (mirrors nn.Linear shapes; weights stored bf16)
# ---------------------------------------------------------------------------
def init_params(key, dim, heads, dim_head):
    inner = heads * dim_head
    k0, k1, k2 = jax.random.split(key, 3)
    wqkv = (0.02 * jax.random.normal(k0, (dim, 3 * inner), jnp.float32)).astype(jnp.bfloat16)
    wo = (0.02 * jax.random.normal(k1, (inner, dim), jnp.float32)).astype(jnp.bfloat16)
    bo = 0.01 * jax.random.normal(k2, (1, dim), jnp.float32)
    return dict(wqkv=wqkv, wo=wo, bo=bo)


# ---------------------------------------------------------------------------
# Pure-JAX reference (same bf16 weights upcast to f32) for a sanity check
# ---------------------------------------------------------------------------
def attention_reference(x, params, *, heads, dim_head):
    B, N, D = x.shape
    inner = heads * dim_head
    scale = dim_head ** -0.5
    wqkv = params["wqkv"].astype(jnp.float32)
    wo = params["wo"].astype(jnp.float32)
    bo = params["bo"]
    qkv = jnp.einsum('bnd,df->bnf', x, wqkv)
    q, k, v = jnp.split(qkv, 3, axis=-1)
    to_heads = lambda t: t.reshape(B, N, heads, dim_head).transpose(0, 2, 1, 3)
    q, k, v = map(to_heads, (q, k, v))
    dots = jnp.einsum('bhqd,bhkd->bhqk', q, k) * scale
    attn = jax.nn.softmax(dots, axis=-1)
    out = jnp.einsum('bhqk,bhkd->bhqd', attn, v)
    out = out.transpose(0, 2, 1, 3).reshape(B, N, inner)
    return out @ wo + bo


if __name__ == "__main__":
    # Small config consistent with the module (b, n, dim)
    B, N, dim = 2, 8, 32
    heads, dim_head = 4, 8

    key = jax.random.PRNGKey(0)
    kx, kp = jax.random.split(key)
    x = jax.random.normal(kx, (B, N, dim), jnp.float32)
    params = init_params(kp, dim, heads, dim_head)

    try:
        out = attention_forward(x, params, heads=heads, dim_head=dim_head,
                                single_buffer_weights=True)
        out = jax.block_until_ready(out)
    except Exception:
        # Fallback if this JAX build rejects single-buffered (Buffered(1)) weights.
        out = attention_forward(x, params, heads=heads, dim_head=dim_head,
                                single_buffer_weights=False)
        out = jax.block_until_ready(out)

    assert out.shape == (B, N, dim)

    # Lenient numerical sanity check (bf16 matmul/exp path vs f32 reference).
    ref = attention_reference(x, params, heads=heads, dim_head=dim_head)
    rel_err = float(jnp.max(jnp.abs(out - ref)) / (jnp.max(jnp.abs(ref)) + 1e-6))
    assert rel_err < 5e-2, f"relative error too large: {rel_err}"

    print("KERNEL_OK")
</pallas_src>

<mosaic_0001>
module attributes {stable_mosaic.version = 11 : i64} {
  func.func @kv_proj_kernel(%arg0: i32, %arg1: i32, %arg2: memref<1x8x32xbf16, #tpu.memory_space<vmem>>, %arg3: memref<32x64xbf16, #tpu.memory_space<vmem>>, %arg4: memref<1x8x32xbf16, #tpu.memory_space<vmem>>, %arg5: memref<1x8x32xbf16, #tpu.memory_space<vmem>>) attributes {dimension_semantics = [#tpu.dimension_semantics<parallel>, #tpu.dimension_semantics<parallel>], iteration_bounds = array<i64: 2, 1>, scalar_prefetch = 0 : i64, scratch_operands = 0 : i64, tpu.core_type = #tpu.core_type<tc>, window_params = [{transform_indices = @transform_0, window_bounds = array<i64: 1, 8, 32>}, {pipeline_mode = #tpu.pipeline_mode<synchronous>, transform_indices = @transform_1, window_bounds = array<i64: 32, 64>}, {transform_indices = @transform_2, window_bounds = array<i64: 1, 8, 32>}, {transform_indices = @transform_3, window_bounds = array<i64: 1, 8, 32>}]} {
    %c0 = arith.constant 0 : index
    %c0_0 = arith.constant 0 : index
    %c0_1 = arith.constant 0 : index
    %0 = vector.load %arg2[%c0, %c0_0, %c0_1] : memref<1x8x32xbf16, #tpu.memory_space<vmem>>, vector<1x8x32xbf16>
    %1 = vector.shape_cast %0 : vector<1x8x32xbf16> to vector<8x32xbf16>
    %c0_2 = arith.constant 0 : index
    %c0_3 = arith.constant 0 : index
    %2 = vector.load %arg3[%c0_2, %c0_3] : memref<32x64xbf16, #tpu.memory_space<vmem>>, vector<32x64xbf16>
    %cst = arith.constant dense<0.000000e+00> : vector<8x64xf32>
    %3 = tpu.matmul %1, %2, %cst {dimension_numbers = #tpu.dot_dimension_numbers<[1], [0], [0], [1], [0, 0, 1, 1], [], []>} : vector<8x32xbf16>, vector<32x64xbf16>, vector<8x64xf32> -> vector<8x64xf32>
    %4 = vector.extract_strided_slice %3 {offsets = [0, 0], sizes = [8, 32], strides = [1, 1]} : vector<8x64xf32> to vector<8x32xf32>
    %5 = arith.truncf %4 : vector<8x32xf32> to vector<8x32xbf16>
    %c0_4 = arith.constant 0 : index
    %c0_5 = arith.constant 0 : index
    %c0_6 = arith.constant 0 : index
    %6 = vector.load %arg4[%c0_4, %c0_5, %c0_6] : memref<1x8x32xbf16, #tpu.memory_space<vmem>>, vector<1x8x32xbf16>
    %7 = vector.shape_cast %6 : vector<1x8x32xbf16> to vector<8x32xbf16>
    %8 = vector.shape_cast %5 : vector<8x32xbf16> to vector<1x8x32xbf16>
    tpu.vector_store %arg4[%c0_4, %c0_5, %c0_6], %8 {strides = array<i32>} : memref<1x8x32xbf16, #tpu.memory_space<vmem>>, vector<1x8x32xbf16>,
    %9 = vector.extract_strided_slice %3 {offsets = [0, 32], sizes = [8, 32], strides = [1, 1]} : vector<8x64xf32> to vector<8x32xf32>
    %10 = arith.truncf %9 : vector<8x32xf32> to vector<8x32xbf16>
    %c0_7 = arith.constant 0 : index
    %c0_8 = arith.constant 0 : index
    %c0_9 = arith.constant 0 : index
    %11 = vector.load %arg5[%c0_7, %c0_8, %c0_9] : memref<1x8x32xbf16, #tpu.memory_space<vmem>>, vector<1x8x32xbf16>
    %12 = vector.shape_cast %11 : vector<1x8x32xbf16> to vector<8x32xbf16>
    %13 = vector.shape_cast %10 : vector<8x32xbf16> to vector<1x8x32xbf16>
    tpu.vector_store %arg5[%c0_7, %c0_8, %c0_9], %13 {strides = array<i32>} : memref<1x8x32xbf16, #tpu.memory_space<vmem>>, vector<1x8x32xbf16>,
    return
  }
  func.func @transform_0(%arg0: i32, %arg1: i32) -> (i32, i32, i32) {
    %c0_i32 = arith.constant 0 : i32
    %c0_i32_0 = arith.constant 0 : i32
    return %arg0, %arg1, %c0_i32 : i32, i32, i32
  }
  func.func @transform_1(%arg0: i32, %arg1: i32) -> (i32, i32) {
    %c0_i32 = arith.constant 0 : i32
    %c0_i32_0 = arith.constant 0 : i32
    %c0_i32_1 = arith.constant 0 : i32
    return %c0_i32, %c0_i32_0 : i32, i32
  }
  func.func @transform_2(%arg0: i32, %arg1: i32) -> (i32, i32, i32) {
    %c0_i32 = arith.constant 0 : i32
    %c0_i32_0 = arith.constant 0 : i32
    return %arg0, %arg1, %c0_i32 : i32, i32, i32
  }
  func.func @transform_3(%arg0: i32, %arg1: i32) -> (i32, i32, i32) {
    %c0_i32 = arith.constant 0 : i32
    %c0_i32_0 = arith.constant 0 : i32
    return %arg0, %arg1, %c0_i32 : i32, i32, i32
  }
}

module attributes {stable_mosaic.version = 11 : i64} {
  func.func @kv_proj_kernel(%arg0: i32, %arg1: i32, %arg2: memref<1x8x32xbf16, #tpu.memory_space<vmem>>, %arg3: memref<32x64xbf16, #tpu.memory_space<vmem>>, %arg4: memref<1x8x32xbf16, #tpu.memory_space<vmem>>, %arg5: memref<1x8x32xbf16, #tpu.memory_space<vmem>>) attributes {dimension_semantics = [#tpu.dimension_semantics<parallel>, #tpu.dimension_semantics<parallel>], iteration_bounds = array<i64: 2, 1>, scalar_prefetch = 0 : i64, scratch_operands = 0 : i64, tpu.core_type = #tpu.core_type<tc>, window_params = [{transform_indices = @transform_0, window_bounds = array<i64: 1, 8, 32>}, {pipeline_mode = #tpu.pipeline_mode<synchronous>, transform_indices = @transform_1, window_bounds = array<i64: 32, 64>}, {transform_indices = @transform_2, window_bounds = array<i64: 1, 8, 32>}, {transform_indices = @transform_3, window_bounds = array<i64: 1, 8, 32>}]} {
    %c0 = arith.constant 0 : index
    %c0_0 = arith.constant 0 : index
    %c0_1 = arith.constant 0 : index
    %0 = vector.load %arg2[%c0, %c0_0, %c0_1] : memref<1x8x32xbf16, #tpu.memory_space<vmem>>, vector<1x8x32xbf16>
    %1 = vector.shape_cast %0 : vector<1x8x32xbf16> to vector<8x32xbf16>
    %c0_2 = arith.constant 0 : index
    %c0_3 = arith.constant 0 : index
    %2 = vector.load %arg3[%c0_2, %c0_3] : memref<32x64xbf16, #tpu.memory_space<vmem>>, vector<32x64xbf16>
    %cst = arith.constant dense<0.000000e+00> : vector<8x64xf32>
    %3 = tpu.matmul %1, %2, %cst {dimension_numbers = #tpu.dot_dimension_numbers<[1], [0], [0], [1], [0, 0, 1, 1], [], []>} : vector<8x32xbf16>, vector<32x64xbf16>, vector<8x64xf32> -> vector<8x64xf32>
    %4 = vector.extract_strided_slice %3 {offsets = [0, 0], sizes = [8, 32], strides = [1, 1]} : vector<8x64xf32> to vector<8x32xf32>
    %5 = arith.truncf %4 : vector<8x32xf32> to vector<8x32xbf16>
    %c0_4 = arith.constant 0 : index
    %c0_5 = arith.constant 0 : index
    %c0_6 = arith.constant 0 : index
    %6 = vector.load %arg4[%c0_4, %c0_5, %c0_6] : memref<1x8x32xbf16, #tpu.memory_space<vmem>>, vector<1x8x32xbf16>
    %7 = vector.shape_cast %6 : vector<1x8x32xbf16> to vector<8x32xbf16>
    %8 = vector.shape_cast %5 : vector<8x32xbf16> to vector<1x8x32xbf16>
    tpu.vector_store %arg4[%c0_4, %c0_5, %c0_6], %8 {strides = array<i32>} : memref<1x8x32xbf16, #tpu.memory_space<vmem>>, vector<1x8x32xbf16>,
    %9 = vector.extract_strided_slice %3 {offsets = [0, 32], sizes = [8, 32], strides = [1, 1]} : vector<8x64xf32> to vector<8x32xf32>
    %10 = arith.truncf %9 : vector<8x32xf32> to vector<8x32xbf16>
    %c0_7 = arith.constant 0 : index
    %c0_8 = arith.constant 0 : index
    %c0_9 = arith.constant 0 : index
    %11 = vector.load %arg5[%c0_7, %c0_8, %c0_9] : memref<1x8x32xbf16, #tpu.memory_space<vmem>>, vector<1x8x32xbf16>
    %12 = vector.shape_cast %11 : vector<1x8x32xbf16> to vector<8x32xbf16>
    %13 = vector.shape_cast %10 : vector<8x32xbf16> to vector<1x8x32xbf16>
    tpu.vector_store %arg5[%c0_7, %c0_8, %c0_9], %13 {strides = array<i32>} : memref<1x8x32xbf16, #tpu.memory_space<vmem>>, vector<1x8x32xbf16>,
    return
  }
  func.func @transform_0(%arg0: i32, %arg1: i32) -> (i32, i32, i32) {
    %c0_i32 = arith.constant 0 : i32
    %c0_i32_0 = arith.constant 0 : i32
    return %arg0, %arg1, %c0_i32 : i32, i32, i32
  }
  func.func @transform_1(%arg0: i32, %arg1: i32) -> (i32, i32) {
    %c0_i32 = arith.constant 0 : i32
    %c0_i32_0 = arith.constant 0 : i32
    %c0_i32_1 = arith.constant 0 : i32
    return %c0_i32, %c0_i32_0 : i32, i32
  }
  func.func @transform_2(%arg0: i32, %arg1: i32) -> (i32, i32, i32) {
    %c0_i32 = arith.constant 0 : i32
    %c0_i32_0 = arith.constant 0 : i32
    return %arg0, %arg1, %c0_i32 : i32, i32, i32
  }
  func.func @transform_3(%arg0: i32, %arg1: i32) -> (i32, i32, i32) {
    %c0_i32 = arith.constant 0 : i32
    %c0_i32_0 = arith.constant 0 : i32
    return %arg0, %arg1, %c0_i32 : i32, i32, i32
  }
}

</mosaic_0001>

<bundles_post_ra>
// kernel: tpu_custom_call.1
= control target key start
LH: loop header
LB: loop body
LE: loop exit
PB: predicated region body
PF: predicated region fallthrough
CT: control target
= control target key end

     0   :  { %9 = vsyncpa [#allocation3], 0  ;;  %s990_s0 = inlined_call_operand.hbm [shape: bf16[2,8,32], index: 0, kind: input, shape index: {}]   ;;  %s991_s1 = inlined_call_operand.hbm [shape: bf16[32,64], index: 1, kind: input, shape index: {}]   ;;  %s992_s2 = inlined_call_operand.hbm [shape: bf16[2,8,32], index: 2, kind: output, shape index: {0}]   ;;  %s993_s3 = inlined_call_operand.hbm [shape: bf16[2,8,32], index: 3, kind: output, shape index: {1}]  }
   0x1   :  { %11 = vsyncpa [#allocation3 + $0x1], 0 }
   0x2   :  { %12 = vsyncpa [#allocation6], 0 }
   0x3   :  { %13 = vsyncpa [#allocation4], 0 }
   0x4   :  { %15 = vsyncpa [#allocation4 + $0x1], 0 }
   0x5   :  { %16 = vsyncpa [#allocation9], 0 }
   0x6   :  { %18 = vsyncpa [#allocation9 + $0x1], 0  ;;  %s778_s12 = smov 0   ;;  %s780_s13 = smov 0  }
   0x7   :  { %s782_s14 = smov 0   ;;  %s784_s15 = smov 0  }
   0x8   :  { %s786_s16 = smov 0   ;;  %s788_s17 = smov 0  }
   0x9 LB: > { %s460_s18 = sadd.s32 4294967295, %s747_s17   ;;  %s461_s19 = sadd.s32 4294967294, %s747_s17   ;;  %s747_s17 = sphi %s788_s17, %s24_s17   ;;  %s743_s16 = sphi %s786_s16, %s1011_s16   ;;  %s739_s15 = sphi %s784_s15, %s1010_s15   ;;  %s735_s14 = sphi %s782_s14, %s1009_s14   ;;  %s731_s13 = sphi %s780_s13, %s1008_s13   ;;  %s727_s12 = sphi %s778_s12, %s1007_s12  }
   0xa   : > { %p58_p0 = scmp.ne.s32.totalorder %s731_s13, %s727_s12  ;;  %p812_p1 = scmp.eq.s32.totalorder %s460_s18, 0 }
   0xb   : > { %p816_p2 = scmp.eq.s32.totalorder %s460_s18, 1  ;;  %p111_p3 = scmp.eq.s32.totalorder %s461_s19, 1 }
   0xc   : > { %p822_p4 = por %p812_p1, %p58_p0  ;;  %p462_p5 = scmp.ge.s32.totalorder %s747_s17, 1 }
   0xd   : > { %p827_p6 = por %p111_p3, %p58_p0  ;;  %p146_p7 = scmp.lt.s32.totalorder %s747_s17, 3 }
   0xe   : > { %s997_s22 = scalar_select %p822_p4, 1, 0 }
   0xf   : > { %s998_s23 = scalar_select %p827_p6, 1, 0 }
  0x10   : > { %p832_p8 = pnand %p462_p5, %p146_p7  ;;  %s749_s25 = smov [#allocation5]  }
  0x11   : > { %s158_s26 = sshll.u32 %s749_s25, 4  ;;  %s36_s28 = sadd.s32 1, %s743_s16  ;;  %s159_s26 = int_to_ptr.vmem [resolvable:$true] %s158_s26 }
  0x12   : > { %p504_p9 = pneg %p832_p8  ;;  %s590_s29 = scalar_lea.vmem %s159_s26, 256 }
  0x13   : > { %p591_p13 = scmp.ne.s32.totalorder %s159_s26, %s590_s29  ;;  %p598_p5 = scmp.lt.s32.totalorder %s159_s26, %s159_s26 }
  0x14   : > { %p841_p11 = pnand %p504_p9, %p812_p1  ;;  %p599_p7 = scmp.lt.s32.totalorder %s590_s29, %s590_s29 }
  0x16   : > { %p581_p12 = pneg %p841_p11  ;;  %p600_p6 = por %p599_p7, %p598_p5 }
  0x18   : > { %p593_p0 = pnand %p591_p13, %p581_p12 }
  0x1a   : > { %p594_p3 = pneg %p593_p0 }
  0x1c   : > { %p601_p4 = pnand %p600_p6, %p594_p3 }
  0x1e   : > { %604 = shalt.err (!%p601_p4)
}
  0x1f   : > { %s750_s30 = smov 64   ;;  %s751_s4 = smov 4  }
  0x20   : > { %507 = dma.hbm_to_vmem [thread:$0]  (!%p841_p11), %s991_s1, 256, %s159_s26, [#allocation6], %s750_s30, %s750_s30, %s751_s4  }
  0x21   : > { %p38_p6 = scmp.ge.s32.totalorder %s36_s28, 2  ;;  %s45_s7 = sadd.s32 1, %s735_s14 }
  0x22   : > { %p52_p4 = scmp.ne.s32.totalorder %s735_s14, %s731_s13  ;;  %p53_p9 = scmp.eq.s32.totalorder %s747_s17, 0 }
  0x23   : > { %s1013_s28 = smov (%p38_p6, %s36_s28), 0  ;;  %p520_p0 = scmp.lt.s32.totalorder %s747_s17, 2 }
  0x24   : > { %p859_p12 = por %p53_p9, %p52_p4  ;;  %p865_p13 = por %p816_p2, %p52_p4 }
  0x25   : > { %s40_s10 = ssub.s32 %s743_s16, %s1013_s28  ;;  %s172_s11 = sand.u32 1, %s735_s14  }
  0x26   : > { %p43_p11 = scmp.eq.s32.totalorder %s40_s10, 0  ;;  %s465_s18 = sshll.u32 %s172_s11, 2 }
  0x27   : > { %s466_s25 = sshll.u32 %s743_s16, 6  ;;  %s176_s30 = scalar_lea.vmem [#allocation2], %s465_s18 }
  0x28   : > { %s874_s19 = scalar_select %p43_p11, %s735_s14, %s45_s7  }
  0x29   : > { %s182_s29 = scalar_lea.hbm %s990_s0, %s466_s25  ;;  %s184_s4 = sshll.u32 %s176_s30, 4  ;;  %s185_s4 = int_to_ptr.vmem [resolvable:$true] %s184_s4 }
  0x2a   : > { %p882_p2 = pnand %p520_p0, %p859_p12  ;;  %s173_s5 = scalar_lea.sflag [#allocation3], %s172_s11 }
  0x2b   : > { %s618_s6 = scalar_lea.vmem %s185_s4, 64  ;;  %s752_s7 = smov [#allocation2]  }
  0x2c   : > { %p607_p3 = pneg %p882_p2  ;;  %p619_p5 = scmp.ne.s32.totalorder %s185_s4, %s618_s6 }
  0x2d   : > { %s623_s10 = sshll.u32 %s752_s7, 4  ;;  %s624_s10 = int_to_ptr.vmem [resolvable:$false] %s623_s10 }
  0x2e   : > { %p621_p7 = pnand %p619_p5, %p607_p3  ;;  %s625_s25 = scalar_lea.vmem %s624_s10, 128 }
  0x2f   : > { %p626_p4 = scmp.lt.s32.totalorder %s185_s4, %s624_s10  ;;  %p627_p9 = scmp.lt.s32.totalorder %s625_s25, %s618_s6 }
  0x30   : > { %p622_p6 = pneg %p621_p7 }
  0x31   : > { %p628_p11 = por %p627_p9, %p626_p4 }
  0x33   : > { %p629_p10 = pnand %p628_p11, %p622_p6 }
  0x35   : > { %632 = shalt.err (!%p629_p10)
}
  0x36   : > { %511 = dma.hbm_to_vmem [thread:$0]  (!%p882_p2), %s182_s29, 64, %s185_s4, %s173_s5  }
  0x37   : > { %193 = sbr.rel (%p832_p8) target bundleno = 395 (0x18b), region = 28  ;;  %s893_s8 = sand.u32 (!%p832_p8), 1, %s731_s13  }
  0x38   : > { %s896_s11 = sshll.u32 (!%p832_p8), %s893_s8, 2  ;;  %s196_s18 = scalar_lea.sflag (!%p832_p8), [#allocation3], %s893_s8 }
  0x39   : > { %s199_s26 = scalar_lea.vmem (!%p832_p8), [#allocation2], %s896_s11  ;;  %p1004_p12 = scmp.ne.s32.totalorder (!%p832_p8), %s997_s22, 0 }
  0x3c   : > { %710 = dma.done.wait (%p1004_p12), %s196_s18, 64  }
  0x3d   : > { %712 = vsyncadd (%p1004_p12), %s196_s18, 4294967232 }
  0x3e   : > { %714 = dma.done.wait (%p812_p1), [#allocation6], 256  }
  0x3f   : > { %716 = vsyncadd (%p812_p1), [#allocation6], 4294967040  ;;  %v753_v0 = vmov 0.0   ;;  %vm754_vm0 = vmmov 0   ;;  %v577_v1 = vld [vmem:[#allocation5 + $0x8] sm:$0xff]   ;;  %v578_v2 = vld [vmem:[#allocation5] sm:$0xff]  }
  0x40   : > { %486 = vmatprep.subr.bf16.mxu0 %v753_v0  ;;  %490 = vmatprep.mubr.msk.bf16.mxu0 %vm754_vm0, %v753_v0  ;;  %v232_v3 = vld [vmem:[%s199_s26] sm:$0xf]  ;;  %vm249_vm1 = vcmask 261120   ;;  %s478_s22 = sshll.u32 %s739_s15, 6  ;;  %s223_s20 = scalar_lea.vmem [#allocation7], %s896_s11  ;;  %vm294_vm2 = vcmask 257024  }
  0x41   : > { %487 = vmatpush3.bf16.msra.mxu0 %v577_v1  ;;  %s323_s24 = sshll.u32 %s223_s20, 4  ;;  %s915_s30 = scalar_lea.hbm %s992_s2, %s478_s22  ;;  %s917_s24 = int_to_ptr.vmem [resolvable:$true] %s323_s24 }
  0x42   : > { %488 = vmatprep.subr.bf16.mxu0 %v753_v0  ;;  %s755_s4 = smov 96   ;;  %s304_s21 = scalar_lea.sflag [#allocation4], %s893_s8 }
  0x43   : > { %s633_s5 = scalar_lea.vmem %s917_s24, 64  ;;  %s756_s6 = smov [#allocation7]  }
  0x44   : > { %p634_p1 = scmp.ne.s32.totalorder %s917_s24, %s633_s5  ;;  %s637_s7 = sshll.u32 %s756_s6, 4  ;;  %s638_s7 = int_to_ptr.vmem [resolvable:$false] %s637_s7 }
  0x45   : > { %489 = vmatpush3.bf16.msra.mxu0 %v578_v2  ;;  %s639_s10 = scalar_lea.vmem %s638_s7, 128  ;;  %p640_p0 = scmp.lt.s32.totalorder %s917_s24, %s638_s7 }
  0x46   : > { %p635_p8 = pnand %p634_p1, %p865_p13  ;;  %p641_p2 = scmp.lt.s32.totalorder %s639_s10, %s633_s5 }
  0x48   : > { %491 = vmatmul.mubr.msk.bf16.vlgmr.msra.gmra.mxu0 %vm249_vm1, %v232_v3  ;;  %p636_p10 = pneg %p635_p8  ;;  %p642_p3 = por %p641_p2, %p640_p0 }
  0x4a   : > { %p643_p5 = pnand %p642_p3, %p636_p10 }
 0x108   : > { %v287_v4 = vpop.f32.mrf.mxu0 }
 0x109   : > { %v293_v5 = vpack.c.bf16 %v287_v4, %v287_v4 }
 0x10a   : > { %v492_v6 = vpop.f32.mrf.mxu0 }
 0x10b   : > { %299 = vrot.lane.b32.xlu0 %v293_v5, %s755_s4  ;;  %295 = vst.msk [vmem:[%s223_s20] sm:$0xf] %vm294_vm2, %v293_v5 }
 0x10c   : > { %v290_v7 = vpop.f32.mrf.mxu0 }
 0x10d   : > { %646 = shalt.err (!%p643_p5)
}
 0x10e   : > { %s647_s25 = scalar_lea.hbm %s915_s30, 64  ;;  %s651_s20 = scalar_lea.hbm %s992_s2, 128 }
 0x10f   : > { %p648_p7 = scmp.ne.s32.totalorder %s915_s30, %s647_s25  ;;  %p652_p9 = scmp.lt.s32.totalorder %s915_s30, %s992_s2 }
 0x110   : > { %p653_p11 = scmp.lt.s32.totalorder %s651_s20, %s647_s25 }
 0x111   : > { %p649_p6 = pnand %p648_p7, %p865_p13 }
 0x112   : > { %p654_p12 = por %p653_p11, %p652_p9 }
 0x113   : > { %p650_p4 = pneg %p649_p6 }
 0x115   : > { %p655_p1 = pnand %p654_p12, %p650_p4 }
 0x117   : > { %658 = shalt.err (!%p655_p1)
}
 0x118   : > { %500 = dma.vmem_to_hbm [thread:$0]  (%p865_p13), %s917_s24, 64, %s915_s30, %s304_s21   ;;  %v493_v8 = vpop.f32.mrf.mxu0 }
 0x119   : > { %s230_s4 = scalar_lea.vmem [#allocation8], %s896_s11  ;;  %s947_s10 = scalar_lea.hbm %s993_s3, %s478_s22 }
 0x11a   : > { %s337_s5 = sshll.u32 %s230_s4, 4  ;;  %s309_s25 = scalar_lea.sflag [#allocation9], %s893_s8  ;;  %s338_s5 = int_to_ptr.vmem [resolvable:$true] %s337_s5 }
 0x11b   : > { %s659_s18 = scalar_lea.vmem %s338_s5, 64  ;;  %s757_s24 = smov [#allocation8]  }
 0x11c   : > { %p660_p8 = scmp.ne.s32.totalorder %s338_s5, %s659_s18  ;;  %s663_s30 = sshll.u32 %s757_s24, 4  ;;  %s664_s30 = int_to_ptr.vmem [resolvable:$false] %s663_s30 }
 0x11d   : > { %s665_s11 = scalar_lea.vmem %s664_s30, 128  ;;  %p666_p2 = scmp.lt.s32.totalorder %s338_s5, %s664_s30 }
 0x11e   : > { %p661_p10 = pnand %p660_p8, %p865_p13  ;;  %p667_p3 = scmp.lt.s32.totalorder %s665_s11, %s659_s18 }
 0x120   : > { %p662_p0 = pneg %p661_p10  ;;  %p668_p5 = por %p667_p3, %p666_p2 }
 0x122   : > { %p669_p7 = pnand %p668_p5, %p662_p0 }
 0x17d   : > { %v300_v9 = vpop.permute.xlu0 %299 }
 0x17e   : > { %302 = vst.msk [vmem:[%s230_s4] sm:$0xf] %vm294_vm2, %v300_v9 }
 0x17f   : > { %672 = shalt.err (!%p669_p7)
}
 0x180   : > { %s673_s15 = scalar_lea.hbm %s947_s10, 64  ;;  %s677_s21 = scalar_lea.hbm %s993_s3, 128 }
 0x181   : > { %p674_p6 = scmp.ne.s32.totalorder %s947_s10, %s673_s15  ;;  %p678_p11 = scmp.lt.s32.totalorder %s947_s10, %s993_s3 }
 0x182   : > { %p679_p12 = scmp.lt.s32.totalorder %s677_s21, %s673_s15 }
 0x183   : > { %p675_p4 = pnand %p674_p6, %p865_p13 }
 0x184   : > { %p680_p1 = por %p679_p12, %p678_p11 }
 0x185   : > { %p676_p9 = pneg %p675_p4 }
 0x187   : > { %p681_p8 = pnand %p680_p1, %p676_p9 }
 0x189   : > { %684 = shalt.err (!%p681_p8)
}
 0x18a   : > { %501 = dma.vmem_to_hbm [thread:$0]  (%p865_p13), %s338_s5, 64, %s947_s10, %s309_s25  }
 0x18b PF: > { %s349_s27 = sand.u32 1, %s727_s12   ;;  %p1005_p10 = scmp.ne.s32.totalorder %s998_s23, 0 }
 0x18c   : > { %p1006_p0 = scmp.ge.s32.totalorder %s747_s17, 2  ;;  %s350_s29 = scalar_lea.sflag [#allocation4], %s349_s27 }
 0x18e   : > { %p513_p2 = pnand %p1006_p0, %p1005_p10 }
 0x190   : > { %p514_p3 = pneg %p513_p2 }
 0x192   : > { %718 = dma.done.wait (%p514_p3), %s350_s29, 64  }
 0x193   : > { %720 = vsyncadd (%p514_p3), %s350_s29, 4294967232  ;;  %s359_s4 = scalar_lea.sflag [#allocation9], %s349_s27 }
 0x194   : > { %722 = dma.done.wait (%p514_p3), %s359_s4, 64  }
 0x195   : > { %724 = vsyncadd (%p514_p3), %s359_s4, 4294967232  ;;  %s24_s17 = sadd.s32 1, %s747_s17   ;;  %s1007_s12 = smov %s731_s13 }
 0x196   : > { %p21_p5 = scmp.ge.s32.totalorder %s24_s17, 4   ;;  %s1008_s13 = smov %s735_s14 }
 0x197   : > { %s1009_s14 = smov %s874_s19  ;;  %s1010_s15 = smov %s743_s16 }
 0x198   : > { %s1011_s16 = smov %s1013_s28  ;;  %23 = sbr.rel (!%p21_p5) target bundleno = 9 (0x9), region = 94 }
 0x19d   :  { %364 = vsyncpa [#allocation3], 1 }
 0x19e   :  { %366 = vsyncpa [#allocation3 + $0x1], 1 }
 0x19f   :  { %367 = vsyncpa [#allocation6], 1 }
 0x1a0   :  { %368 = vsyncpa [#allocation4], 1 }
 0x1a1   :  { %370 = vsyncpa [#allocation4 + $0x1], 1 }
 0x1a2   :  { %371 = vsyncpa [#allocation9], 1 }
 0x1a3   :  { %373 = vsyncpa [#allocation9 + $0x1], 1 }

// kernel: tpu_custom_call.1
= control target key start
LH: loop header
LB: loop body
LE: loop exit
PB: predicated region body
PF: predicated region fallthrough
CT: control target
= control target key end

     0   :  { %9 = vsyncpa [#allocation3], 0  ;;  %s990_s0 = inlined_call_operand.hbm [shape: bf16[2,8,32], index: 0, kind: input, shape index: {}]   ;;  %s991_s1 = inlined_call_operand.hbm [shape: bf16[32,64], index: 1, kind: input, shape index: {}]   ;;  %s992_s2 = inlined_call_operand.hbm [shape: bf16[2,8,32], index: 2, kind: output, shape index: {0}]   ;;  %s993_s3 = inlined_call_operand.hbm [shape: bf16[2,8,32], index: 3, kind: output, shape index: {1}]  }
   0x1   :  { %11 = vsyncpa [#allocation3 + $0x1], 0 }
   0x2   :  { %12 = vsyncpa [#allocation6], 0 }
   0x3   :  { %13 = vsyncpa [#allocation4], 0 }
   0x4   :  { %15 = vsyncpa [#allocation4 + $0x1], 0 }
   0x5   :  { %16 = vsyncpa [#allocation9], 0 }
   0x6   :  { %18 = vsyncpa [#allocation9 + $0x1], 0  ;;  %s778_s12 = smov 0   ;;  %s780_s13 = smov 0  }
   0x7   :  { %s782_s14 = smov 0   ;;  %s784_s15 = smov 0  }
   0x8   :  { %s786_s16 = smov 0   ;;  %s788_s17 = smov 0  }
   0x9 LB: > { %s460_s18 = sadd.s32 4294967295, %s747_s17   ;;  %s461_s19 = sadd.s32 4294967294, %s747_s17   ;;  %s747_s17 = sphi %s788_s17, %s24_s17   ;;  %s743_s16 = sphi %s786_s16, %s1011_s16   ;;  %s739_s15 = sphi %s784_s15, %s1010_s15   ;;  %s735_s14 = sphi %s782_s14, %s1009_s14   ;;  %s731_s13 = sphi %s780_s13, %s1008_s13   ;;  %s727_s12 = sphi %s778_s12, %s1007_s12  }
   0xa   : > { %p58_p0 = scmp.ne.s32.totalorder %s731_s13, %s727_s12  ;;  %p812_p1 = scmp.eq.s32.totalorder %s460_s18, 0 }
   0xb   : > { %p816_p2 = scmp.eq.s32.totalorder %s460_s18, 1  ;;  %p111_p3 = scmp.eq.s32.totalorder %s461_s19, 1 }
   0xc   : > { %p822_p4 = por %p812_p1, %p58_p0  ;;  %p462_p5 = scmp.ge.s32.totalorder %s747_s17, 1 }
   0xd   : > { %p827_p6 = por %p111_p3, %p58_p0  ;;  %p146_p7 = scmp.lt.s32.totalorder %s747_s17, 3 }
   0xe   : > { %s997_s22 = scalar_select %p822_p4, 1, 0 }
   0xf   : > { %s998_s23 = scalar_select %p827_p6, 1, 0 }
  0x10   : > { %p832_p8 = pnand %p462_p5, %p146_p7  ;;  %s749_s25 = smov [#allocation5]  }
  0x11   : > { %s158_s26 = sshll.u32 %s749_s25, 4  ;;  %s36_s28 = sadd.s32 1, %s743_s16  ;;  %s159_s26 = int_to_ptr.vmem [resolvable:$true] %s158_s26 }
  0x12   : > { %p504_p9 = pneg %p832_p8  ;;  %s590_s29 = scalar_lea.vmem %s159_s26, 256 }
  0x13   : > { %p591_p13 = scmp.ne.s32.totalorder %s159_s26, %s590_s29  ;;  %p598_p5 = scmp.lt.s32.totalorder %s159_s26, %s159_s26 }
  0x14   : > { %p841_p11 = pnand %p504_p9, %p812_p1  ;;  %p599_p7 = scmp.lt.s32.totalorder %s590_s29, %s590_s29 }
  0x16   : > { %p581_p12 = pneg %p841_p11  ;;  %p600_p6 = por %p599_p7, %p598_p5 }
  0x18   : > { %p593_p0 = pnand %p591_p13, %p581_p12 }
  0x1a   : > { %p594_p3 = pneg %p593_p0 }
  0x1c   : > { %p601_p4 = pnand %p600_p6, %p594_p3 }
  0x1e   : > { %604 = shalt.err (!%p601_p4)
}
  0x1f   : > { %s750_s30 = smov 64   ;;  %s751_s4 = smov 4  }
  0x20   : > { %507 = dma.hbm_to_vmem [thread:$0]  (!%p841_p11), %s991_s1, 256, %s159_s26, [#allocation6], %s750_s30, %s750_s30, %s751_s4  }
  0x21   : > { %p38_p6 = scmp.ge.s32.totalorder %s36_s28, 2  ;;  %s45_s7 = sadd.s32 1, %s735_s14 }
  0x22   : > { %p52_p4 = scmp.ne.s32.totalorder %s735_s14, %s731_s13  ;;  %p53_p9 = scmp.eq.s32.totalorder %s747_s17, 0 }
  0x23   : > { %s1013_s28 = smov (%p38_p6, %s36_s28), 0  ;;  %p520_p0 = scmp.lt.s32.totalorder %s747_s17, 2 }
  0x24   : > { %p859_p12 = por %p53_p9, %p52_p4  ;;  %p865_p13 = por %p816_p2, %p52_p4 }
  0x25   : > { %s40_s10 = ssub.s32 %s743_s16, %s1013_s28  ;;  %s172_s11 = sand.u32 1, %s735_s14  }
  0x26   : > { %p43_p11 = scmp.eq.s32.totalorder %s40_s10, 0  ;;  %s465_s18 = sshll.u32 %s172_s11, 2 }
  0x27   : > { %s466_s25 = sshll.u32 %s743_s16, 6  ;;  %s176_s30 = scalar_lea.vmem [#allocation2], %s465_s18 }
  0x28   : > { %s874_s19 = scalar_select %p43_p11, %s735_s14, %s45_s7  }
  0x29   : > { %s182_s29 = scalar_lea.hbm %s990_s0, %s466_s25  ;;  %s184_s4 = sshll.u32 %s176_s30, 4  ;;  %s185_s4 = int_to_ptr.vmem [resolvable:$true] %s184_s4 }
  0x2a   : > { %p882_p2 = pnand %p520_p0, %p859_p12  ;;  %s173_s5 = scalar_lea.sflag [#allocation3], %s172_s11 }
  0x2b   : > { %s618_s6 = scalar_lea.vmem %s185_s4, 64  ;;  %s752_s7 = smov [#allocation2]  }
  0x2c   : > { %p607_p3 = pneg %p882_p2  ;;  %p619_p5 = scmp.ne.s32.totalorder %s185_s4, %s618_s6 }
  0x2d   : > { %s623_s10 = sshll.u32 %s752_s7, 4  ;;  %s624_s10 = int_to_ptr.vmem [resolvable:$false] %s623_s10 }
  0x2e   : > { %p621_p7 = pnand %p619_p5, %p607_p3  ;;  %s625_s25 = scalar_lea.vmem %s624_s10, 128 }
  0x2f   : > { %p626_p4 = scmp.lt.s32.totalorder %s185_s4, %s624_s10  ;;  %p627_p9 = scmp.lt.s32.totalorder %s625_s25, %s618_s6 }
  0x30   : > { %p622_p6 = pneg %p621_p7 }
  0x31   : > { %p628_p11 = por %p627_p9, %p626_p4 }
  0x33   : > { %p629_p10 = pnand %p628_p11, %p622_p6 }
  0x35   : > { %632 = shalt.err (!%p629_p10)
}
  0x36   : > { %511 = dma.hbm_to_vmem [thread:$0]  (!%p882_p2), %s182_s29, 64, %s185_s4, %s173_s5  }
  0x37   : > { %193 = sbr.rel (%p832_p8) target bundleno = 395 (0x18b), region = 28  ;;  %s893_s8 = sand.u32 (!%p832_p8), 1, %s731_s13  }
  0x38   : > { %s896_s11 = sshll.u32 (!%p832_p8), %s893_s8, 2  ;;  %s196_s18 = scalar_lea.sflag (!%p832_p8), [#allocation3], %s893_s8 }
  0x39   : > { %s199_s26 = scalar_lea.vmem (!%p832_p8), [#allocation2], %s896_s11  ;;  %p1004_p12 = scmp.ne.s32.totalorder (!%p832_p8), %s997_s22, 0 }
  0x3c   : > { %710 = dma.done.wait (%p1004_p12), %s196_s18, 64  }
  0x3d   : > { %712 = vsyncadd (%p1004_p12), %s196_s18, 4294967232 }
  0x3e   : > { %714 = dma.done.wait (%p812_p1), [#allocation6], 256  }
  0x3f   : > { %716 = vsyncadd (%p812_p1), [#allocation6], 4294967040  ;;  %v753_v0 = vmov 0.0   ;;  %vm754_vm0 = vmmov 0   ;;  %v577_v1 = vld [vmem:[#allocation5 + $0x8] sm:$0xff]   ;;  %v578_v2 = vld [vmem:[#allocation5] sm:$0xff]  }
  0x40   : > { %486 = vmatprep.subr.bf16.mxu0 %v753_v0  ;;  %490 = vmatprep.mubr.msk.bf16.mxu0 %vm754_vm0, %v753_v0  ;;  %v232_v3 = vld [vmem:[%s199_s26] sm:$0xf]  ;;  %vm249_vm1 = vcmask 261120   ;;  %s478_s22 = sshll.u32 %s739_s15, 6  ;;  %s223_s20 = scalar_lea.vmem [#allocation7], %s896_s11  ;;  %vm294_vm2 = vcmask 257024  }
  0x41   : > { %487 = vmatpush3.bf16.msra.mxu0 %v577_v1  ;;  %s323_s24 = sshll.u32 %s223_s20, 4  ;;  %s915_s30 = scalar_lea.hbm %s992_s2, %s478_s22  ;;  %s917_s24 = int_to_ptr.vmem [resolvable:$true] %s323_s24 }
  0x42   : > { %488 = vmatprep.subr.bf16.mxu0 %v753_v0  ;;  %s755_s4 = smov 96   ;;  %s304_s21 = scalar_lea.sflag [#allocation4], %s893_s8 }
  0x43   : > { %s633_s5 = scalar_lea.vmem %s917_s24, 64  ;;  %s756_s6 = smov [#allocation7]  }
  0x44   : > { %p634_p1 = scmp.ne.s32.totalorder %s917_s24, %s633_s5  ;;  %s637_s7 = sshll.u32 %s756_s6, 4  ;;  %s638_s7 = int_to_ptr.vmem [resolvable:$false] %s637_s7 }
  0x45   : > { %489 = vmatpush3.bf16.msra.mxu0 %v578_v2  ;;  %s639_s10 = scalar_lea.vmem %s638_s7, 128  ;;  %p640_p0 = scmp.lt.s32.totalorder %s917_s24, %s638_s7 }
  0x46   : > { %p635_p8 = pnand %p634_p1, %p865_p13  ;;  %p641_p2 = scmp.lt.s32.totalorder %s639_s10, %s633_s5 }
  0x48   : > { %491 = vmatmul.mubr.msk.bf16.vlgmr.msra.gmra.mxu0 %vm249_vm1, %v232_v3  ;;  %p636_p10 = pneg %p635_p8  ;;  %p642_p3 = por %p641_p2, %p640_p0 }
  0x4a   : > { %p643_p5 = pnand %p642_p3, %p636_p10 }
 0x108   : > { %v287_v4 = vpop.f32.mrf.mxu0 }
 0x109   : > { %v293_v5 = vpack.c.bf16 %v287_v4, %v287_v4 }
 0x10a   : > { %v492_v6 = vpop.f32.mrf.mxu0 }
 0x10b   : > { %299 = vrot.lane.b32.xlu0 %v293_v5, %s755_s4  ;;  %295 = vst.msk [vmem:[%s223_s20] sm:$0xf] %vm294_vm2, %v293_v5 }
 0x10c   : > { %v290_v7 = vpop.f32.mrf.mxu0 }
 0x10d   : > { %646 = shalt.err (!%p643_p5)
}
 0x10e   : > { %s647_s25 = scalar_lea.hbm %s915_s30, 64  ;;  %s651_s20 = scalar_lea.hbm %s992_s2, 128 }
 0x10f   : > { %p648_p7 = scmp.ne.s32.totalorder %s915_s30, %s647_s25  ;;  %p652_p9 = scmp.lt.s32.totalorder %s915_s30, %s992_s2 }
 0x110   : > { %p653_p11 = scmp.lt.s32.totalorder %s651_s20, %s647_s25 }
 0x111   : > { %p649_p6 = pnand %p648_p7, %p865_p13 }
 0x112   : > { %p654_p12 = por %p653_p11, %p652_p9 }
 0x113   : > { %p650_p4 = pneg %p649_p6 }
 0x115   : > { %p655_p1 = pnand %p654_p12, %p650_p4 }
 0x117   : > { %658 = shalt.err (!%p655_p1)
}
 0x118   : > { %500 = dma.vmem_to_hbm [thread:$0]  (%p865_p13), %s917_s24, 64, %s915_s30, %s304_s21   ;;  %v493_v8 = vpop.f32.mrf.mxu0 }
 0x119   : > { %s230_s4 = scalar_lea.vmem [#allocation8], %s896_s11  ;;  %s947_s10 = scalar_lea.hbm %s993_s3, %s478_s22 }
 0x11a   : > { %s337_s5 = sshll.u32 %s230_s4, 4  ;;  %s309_s25 = scalar_lea.sflag [#allocation9], %s893_s8  ;;  %s338_s5 = int_to_ptr.vmem [resolvable:$true] %s337_s5 }
 0x11b   : > { %s659_s18 = scalar_lea.vmem %s338_s5, 64  ;;  %s757_s24 = smov [#allocation8]  }
 0x11c   : > { %p660_p8 = scmp.ne.s32.totalorder %s338_s5, %s659_s18  ;;  %s663_s30 = sshll.u32 %s757_s24, 4  ;;  %s664_s30 = int_to_ptr.vmem [resolvable:$false] %s663_s30 }
 0x11d   : > { %s665_s11 = scalar_lea.vmem %s664_s30, 128  ;;  %p666_p2 = scmp.lt.s32.totalorder %s338_s5, %s664_s30 }
 0x11e   : > { %p661_p10 = pnand %p660_p8, %p865_p13  ;;  %p667_p3 = scmp.lt.s32.totalorder %s665_s11, %s659_s18 }
 0x120   : > { %p662_p0 = pneg %p661_p10  ;;  %p668_p5 = por %p667_p3, %p666_p2 }
 0x122   : > { %p669_p7 = pnand %p668_p5, %p662_p0 }
 0x17d   : > { %v300_v9 = vpop.permute.xlu0 %299 }
 0x17e   : > { %302 = vst.msk [vmem:[%s230_s4] sm:$0xf] %vm294_vm2, %v300_v9 }
 0x17f   : > { %672 = shalt.err (!%p669_p7)
}
 0x180   : > { %s673_s15 = scalar_lea.hbm %s947_s10, 64  ;;  %s677_s21 = scalar_lea.hbm %s993_s3, 128 }
 0x181   : > { %p674_p6 = scmp.ne.s32.totalorder %s947_s10, %s673_s15  ;;  %p678_p11 = scmp.lt.s32.totalorder %s947_s10, %s993_s3 }
 0x182   : > { %p679_p12 = scmp.lt.s32.totalorder %s677_s21, %s673_s15 }
 0x183   : > { %p675_p4 = pnand %p674_p6, %p865_p13 }
 0x184   : > { %p680_p1 = por %p679_p12, %p678_p11 }
 0x185   : > { %p676_p9 = pneg %p675_p4 }
 0x187   : > { %p681_p8 = pnand %p680_p1, %p676_p9 }
 0x189   : > { %684 = shalt.err (!%p681_p8)
}
 0x18a   : > { %501 = dma.vmem_to_hbm [thread:$0]  (%p865_p13), %s338_s5, 64, %s947_s10, %s309_s25  }
 0x18b PF: > { %s349_s27 = sand.u32 1, %s727_s12   ;;  %p1005_p10 = scmp.ne.s32.totalorder %s998_s23, 0 }
 0x18c   : > { %p1006_p0 = scmp.ge.s32.totalorder %s747_s17, 2  ;;  %s350_s29 = scalar_lea.sflag [#allocation4], %s349_s27 }
 0x18e   : > { %p513_p2 = pnand %p1006_p0, %p1005_p10 }
 0x190   : > { %p514_p3 = pneg %p513_p2 }
 0x192   : > { %718 = dma.done.wait (%p514_p3), %s350_s29, 64  }
 0x193   : > { %720 = vsyncadd (%p514_p3), %s350_s29, 4294967232  ;;  %s359_s4 = scalar_lea.sflag [#allocation9], %s349_s27 }
 0x194   : > { %722 = dma.done.wait (%p514_p3), %s359_s4, 64  }
 0x195   : > { %724 = vsyncadd (%p514_p3), %s359_s4, 4294967232  ;;  %s24_s17 = sadd.s32 1, %s747_s17   ;;  %s1007_s12 = smov %s731_s13 }
 0x196   : > { %p21_p5 = scmp.ge.s32.totalorder %s24_s17, 4   ;;  %s1008_s13 = smov %s735_s14 }
 0x197   : > { %s1009_s14 = smov %s874_s19  ;;  %s1010_s15 = smov %s743_s16 }
 0x198   : > { %s1011_s16 = smov %s1013_s28  ;;  %23 = sbr.rel (!%p21_p5) target bundleno = 9 (0x9), region = 94 }
 0x19d   :  { %364 = vsyncpa [#allocation3], 1 }
 0x19e   :  { %366 = vsyncpa [#allocation3 + $0x1], 1 }
 0x19f   :  { %367 = vsyncpa [#allocation6], 1 }
 0x1a0   :  { %368 = vsyncpa [#allocation4], 1 }
 0x1a1   :  { %370 = vsyncpa [#allocation4 + $0x1], 1 }
 0x1a2   :  { %371 = vsyncpa [#allocation9], 1 }
 0x1a3   :  { %373 = vsyncpa [#allocation9 + $0x1], 1 }

</bundles_post_ra>
